<compile_context>
chip_gen: v5e
topology: v5e:2x2
jax: 0.10.0
libtpu: 0.0.40
codegen_flags: <defaults>
</compile_context>

<pallas_src>
import functools

import numpy as np
import jax
import jax.numpy as jnp
from jax import lax
from jax.experimental import pallas as pl
from jax.experimental.pallas import tpu as pltpu

EPS = 1e-5  # PyTorch BatchNorm2d default eps


# ---------------------------------------------------------------------------
# helpers
# ---------------------------------------------------------------------------
def _round_up(v, m):
    return ((v + m - 1) // m) * m


def _pick_tile_h(h):
    # Rows-per-tile along H: whole image column when small, else a multiple of
    # 8 that divides H so every out block stays (8,128)-aligned.
    if h <= 64:
        return h
    for th in range(64, 7, -8):
        if h % th == 0:
            return th
    # TODO(synk): ragged H (no multiple-of-8 divisor) -> masked last tile.
    return h


def _vmem_limit(per_step_bytes):
    # Derived from the per-block working set: x2 for double-buffered
    # pipelining plus headroom, clamped well under the 64/128 MiB physical cap.
    return int(min(120 * 2**20, max(8 * 2**20, 2 * per_step_bytes + 4 * 2**20)))


def _banded_weights(w9, w_sp):
    """(9, Cin, Cout) 3x3 taps -> (3, W*Cin, W*Cout) block-banded matrices.

    Band dy multiplies the input rows at h+dy-1; the dx taps and the conv's
    SAME zero padding along w are folded into the band structure, so the whole
    3x3 conv becomes 3 lane-dense MXU matmuls with K = W*Cin.
    TODO(synk): for very large W (W*C >> MXU K) fall back to per-tap C x C
    matmuls / im2col instead of (W*C)^2 banded weights.
    """
    bands = []
    for dy in range(3):
        b = None
        for dx in range(3):
            sel = np.eye(w_sp, k=1 - dx, dtype=np.float32)   # w_in - w_out == dx-1
            term = jnp.kron(jnp.asarray(sel, w9.dtype), w9[3 * dy + dx])
            b = term if b is None else b + term
        bands.append(b)
    return jnp.stack(bands, axis=0)


def _add_halo(z, th, ht):
    """(N, H, W*C) -> (N, HT, TH+2, W*C): each H-tile plus its +-1-row halo.

    Image-boundary halo rows are zero here and re-masked in-kernel (BN(0)!=0).
    TODO(synk): fetch the halo with in-kernel make_async_copy instead of this
    wrapper-side duplicated gather to avoid the extra ~2/TH HBM traffic.
    """
    zp = jnp.pad(z, ((0, 0), (1, 1), (0, 0)))
    tiles = [zp[:, t * th:t * th + th + 2, :] for t in range(ht)]
    return jnp.stack(tiles, axis=1)


# ---------------------------------------------------------------------------
# kernels
# ---------------------------------------------------------------------------
def _bn_relu_conv_kernel(xh_ref, scale_ref, shift_ref, wb_ref, y_ref, stats_ref,
                         *, th, mm_dtype):
    """BN (precomputed batch-stat scale/shift) -> ReLU -> 3x3 conv on one
    lane-dense (TH, W*C) tile, plus per-tile partial statistics."""
    # BN + ReLU on the halo'd tile (TH+2 rows; rows 0 / TH+1 are the +-1 halo).
    a = jnp.maximum(xh_ref[...] * scale_ref[...] + shift_ref[...], 0.0)

    # Zero halo rows that fall outside the image (conv SAME zero padding in h).
    r = lax.broadcasted_iota(jnp.int32, (th + 2, 1), 0)
    t = pl.program_id(1)
    ok = ((r > 0) | (t > 0)) & ((r < th + 1) | (t < pl.num_programs(1) - 1))
    a = jnp.where(ok, a, 0.0).astype(mm_dtype)

    # 3x3 conv = 3 row-shifted MXU matmuls against block-banded weights (the
    # dx taps / w-padding live inside wb, K = W*C); f32 accumulation.
    acc = jnp.dot(a[0:th], wb_ref[0], preferred_element_type=jnp.float32)
    acc = acc + jnp.dot(a[1:th + 1], wb_ref[1], preferred_element_type=jnp.float32)
    acc = acc + jnp.dot(a[2:th + 2], wb_ref[2], preferred_element_type=jnp.float32)
    y_ref[...] = acc

    # Per-tile partial stats (row 0: sum, row 1: sum of squares); finalized in
    # the wrapper into the next BN's batch stats / the squeeze-excite pool.
    stats_ref[...] = jnp.concatenate(
        [jnp.sum(acc, axis=0, keepdims=True),
         jnp.sum(acc * acc, axis=0, keepdims=True)], axis=0)


def _sqex_residual_kernel(x_ref, y_ref, pooled_ref, wse1_ref, wse2_ref, o_ref,
                          *, w):
    """Squeeze-excite gate (two tiny FCs + sigmoid) and gated residual add on
    one lane-dense tile.  x is re-read here (not kept live through the convs)."""
    hid = jnp.maximum(jnp.dot(pooled_ref[...], wse1_ref[...],
                              preferred_element_type=jnp.float32), 0.0)
    logits = jnp.dot(hid, wse2_ref[...], preferred_element_type=jnp.float32)
    # Exact sigmoid (approx=True would use the EUP slot, but this is a tiny
    # (8, C) tensor and exactness keeps the f32 path tight).
    gate = pl.reciprocal(1.0 + jnp.exp(-logits), approx=False)
    gate_l = jnp.tile(gate[0:1, :], (1, w))           # (1, W*C), lane = w*C + c
    o_ref[...] = x_ref[...] + y_ref[...] * gate_l


# ---------------------------------------------------------------------------
# pallas_call wrappers
# ---------------------------------------------------------------------------
def _bn_relu_conv_pass(xh, scale_l, shift_l, wb, *, n, ht, th, l, mm_dtype):
    mm_bytes = jnp.dtype(mm_dtype).itemsize
    per_step = ((th + 2) * l * 4 + th * l * 4 + 4 * l * 4 + 2 * l * 4
                + 3 * l * l * mm_bytes + 3 * th * l * mm_bytes + th * l * 4)
    kernel = functools.partial(_bn_relu_conv_kernel, th=th, mm_dtype=mm_dtype)
    return pl.pallas_call(
        kernel,
        grid=(n, ht),
        in_specs=[
            pl.BlockSpec((None, None, th + 2, l), lambda i, j: (i, j, 0, 0)),  # halo'd tile
            pl.BlockSpec((1, l), lambda i, j: (0, 0)),                          # BN scale
            pl.BlockSpec((1, l), lambda i, j: (0, 0)),                          # BN shift
            pl.BlockSpec((3, l, l), lambda i, j: (0, 0, 0)),                    # banded conv weights
        ],
        out_specs=[
            pl.BlockSpec((None, th, l), lambda i, j: (i, j, 0)),                # conv output tile
            pl.BlockSpec((None, None, 2, l), lambda i, j: (i, j, 0, 0)),        # partial stats
        ],
        out_shape=[
            jax.ShapeDtypeStruct((n, ht * th, l), jnp.float32),
            jax.ShapeDtypeStruct((n, ht, 2, l), jnp.float32),
        ],
        compiler_params=pltpu.CompilerParams(
            dimension_semantics=("parallel", "parallel"),
            vmem_limit_bytes=_vmem_limit(per_step)),
    )(xh, scale_l, shift_l, wb)


def _sqex_residual_pass(x_img, y2, pooled_p, wse1_p, wse2_p, *, n, ht, th, l, c, w_sp):
    rp = wse1_p.shape[1]
    per_step = 3 * th * l * 4 + 8 * c * 4 + 2 * rp * c * 4
    kernel = functools.partial(_sqex_residual_kernel, w=w_sp)
    return pl.pallas_call(
        kernel,
        grid=(n, ht),
        in_specs=[
            pl.BlockSpec((None, th, l), lambda i, j: (i, j, 0)),   # x (residual)
            pl.BlockSpec((None, th, l), lambda i, j: (i, j, 0)),   # conv2 output
            pl.BlockSpec((None, 8, c), lambda i, j: (i, 0, 0)),    # per-image pooled (row 0)
            pl.BlockSpec((c, rp), lambda i, j: (0, 0)),            # SE FC1 (lane-padded)
            pl.BlockSpec((rp, c), lambda i, j: (0, 0)),            # SE FC2 (lane-padded)
        ],
        out_specs=pl.BlockSpec((None, th, l), lambda i, j: (i, j, 0)),
        out_shape=jax.ShapeDtypeStruct((n, ht * th, l), jnp.float32),
        # x_img is a wrapper-internal temp (created by the layout transpose),
        # safe to donate as the output buffer.
        input_output_aliases={0: 0},
        compiler_params=pltpu.CompilerParams(
            dimension_semantics=("parallel", "parallel"),
            vmem_limit_bytes=_vmem_limit(per_step)),
    )(x_img, y2, pooled_p, wse1_p, wse2_p)


# ---------------------------------------------------------------------------
# forward
# ---------------------------------------------------------------------------
def res_block_sqex(x_nchw, params, matmul_dtype=jnp.bfloat16):
    """ResBlockSqEx forward (training-mode BatchNorm batch statistics).

    matmul_dtype controls the conv MXU operand dtype.  bf16 (default) is the
    native fast path on v5e/v6e/v7x (accumulation stays f32 via
    preferred_element_type); pass jnp.float32 for exact PyTorch-f32 semantics.
    """
    n, c, h, w = x_nchw.shape
    l = w * c
    nhw = n * h * w
    th = _pick_tile_h(h)
    ht = h // th

    # Lane-dense layout: rows = N*H (tiled), lanes = W*C.
    x_nhwc = jnp.transpose(x_nchw, (0, 2, 3, 1)).astype(jnp.float32)
    x_img = x_nhwc.reshape(n, h, l)

    def bn_affine(gamma, beta, mean, var):
        scale_c = gamma * lax.rsqrt(var + EPS)
        shift_c = beta - mean * scale_c
        return (jnp.tile(scale_c, w).reshape(1, l),
                jnp.tile(shift_c, w).reshape(1, l))

    # ---- BN1 stats prologue (tiny XLA reduce over the input).
    mean1 = jnp.mean(x_nhwc, axis=(0, 1, 2))
    var1 = jnp.mean(jnp.square(x_nhwc - mean1), axis=(0, 1, 2))
    scale1, shift1 = bn_affine(params['g1'], params['b1'], mean1, var1)

    w1b = _banded_weights(params['w1'], w).astype(matmul_dtype)
    w2b = _banded_weights(params['w2'], w).astype(matmul_dtype)

    # ---- pass 1: BN1 -> ReLU -> conv1 (tiled) + partial stats for BN2.
    y1, s1 = _bn_relu_conv_pass(_add_halo(x_img, th, ht), scale1, shift1, w1b,
                                n=n, ht=ht, th=th, l=l, mm_dtype=matmul_dtype)

    # ---- BN2 stats finalize from per-tile partials (fold W lane-groups -> C).
    sum2 = s1[:, :, 0, :].sum(axis=(0, 1)).reshape(w, c).sum(axis=0)
    sq2 = s1[:, :, 1, :].sum(axis=(0, 1)).reshape(w, c).sum(axis=0)
    mean2 = sum2 / nhw
    var2 = jnp.maximum(sq2 / nhw - mean2 * mean2, 0.0)
    scale2, shift2 = bn_affine(params['g2'], params['b2'], mean2, var2)

    # ---- pass 2: BN2 -> ReLU -> conv2 (tiled) + partial pool sums.
    y2, s2 = _bn_relu_conv_pass(_add_halo(y1, th, ht), scale2, shift2, w2b,
                                n=n, ht=ht, th=th, l=l, mm_dtype=matmul_dtype)

    # ---- squeeze-excite pool finalize (per image, per channel).
    pooled = s2[:, :, 0, :].sum(axis=1).reshape(n, w, c).sum(axis=1) / (h * w)
    pooled_p = jnp.zeros((n, 8, c), jnp.float32).at[:, 0, :].set(pooled)

    # SE FC weights, lane-padded with zeros so both tiny matmuls are MXU-friendly.
    r = params['wse1'].shape[1]
    rp = _round_up(max(r, 1), 128)
    wse1_p = jnp.zeros((c, rp), jnp.float32).at[:, :r].set(params['wse1'])
    wse2_p = jnp.zeros((rp, c), jnp.float32).at[:r, :].set(params['wse2'])

    # ---- pass 3: SE gate + gated residual add (tiled; re-reads x here).
    out_img = _sqex_residual_pass(x_img, y2, pooled_p, wse1_p, wse2_p,
                                  n=n, ht=ht, th=th, l=l, c=c, w_sp=w)

    return jnp.transpose(out_img.reshape(n, h, w, c), (0, 3, 1, 2))


# ---------------------------------------------------------------------------
# pure-JAX reference (identical semantics)
# ---------------------------------------------------------------------------
def ref_forward(x_nchw, params):
    x = jnp.transpose(x_nchw, (0, 2, 3, 1)).astype(jnp.float32)

    def bn_relu(z, g, b):
        mean = jnp.mean(z, axis=(0, 1, 2), keepdims=True)
        var = jnp.mean((z - mean) ** 2, axis=(0, 1, 2), keepdims=True)
        zn = (z - mean) * lax.rsqrt(var + EPS) * g + b
        return jnp.maximum(zn, 0.0)

    def conv(z, w9):
        wk = w9.reshape(3, 3, w9.shape[1], w9.shape[2])        # HWIO
        return lax.conv_general_dilated(
            z, wk, (1, 1), 'SAME', dimension_numbers=('NHWC', 'HWIO', 'NHWC'))

    y = conv(bn_relu(x, params['g1'], params['b1']), params['w1'])
    y = conv(bn_relu(y, params['g2'], params['b2']), params['w2'])
    pooled = jnp.mean(y, axis=(1, 2))
    hid = jnp.maximum(pooled @ params['wse1'], 0.0)
    gate = 1.0 / (1.0 + jnp.exp(-(hid @ params['wse2'])))
    out = x + y * gate[:, None, None, :]
    return jnp.transpose(out, (0, 3, 1, 2))


if __name__ == "__main__":
    # n_features=32 so the '/16' squeeze-excite reduction is nonzero (32//16=2).
    N, C, H, W = 2, 32, 8, 8
    R = C // 16

    key = jax.random.PRNGKey(0)
    ks = jax.random.split(key, 9)
    params = {
        'g1': 1.0 + 0.1 * jax.random.normal(ks[0], (C,), jnp.float32),
        'b1': 0.1 * jax.random.normal(ks[1], (C,), jnp.float32),
        'w1': 0.1 * jax.random.normal(ks[2], (9, C, C), jnp.float32),   # (tap, Cin, Cout)
        'g2': 1.0 + 0.1 * jax.random.normal(ks[3], (C,), jnp.float32),
        'b2': 0.1 * jax.random.normal(ks[4], (C,), jnp.float32),
        'w2': 0.1 * jax.random.normal(ks[5], (9, C, C), jnp.float32),
        'wse1': 0.1 * jax.random.normal(ks[6], (C, R), jnp.float32),    # Linear1 (pre-transposed)
        'wse2': 0.1 * jax.random.normal(ks[7], (R, C), jnp.float32),    # Linear2 (pre-transposed)
    }
    x = jax.random.normal(ks[8], (N, C, H, W), jnp.float32)

    ref = jax.block_until_ready(ref_forward(x, params))

    # Exact path (f32 MXU operands): tight check against the f32 reference.
    fwd_f32 = jax.jit(lambda xx, pp: res_block_sqex(xx, pp, matmul_dtype=jnp.float32))
    out_f32 = jax.block_until_ready(fwd_f32(x, params))
    assert out_f32.shape == x.shape
    assert bool(jnp.all(jnp.isfinite(out_f32)))
    assert bool(jnp.allclose(out_f32, ref, atol=2e-4, rtol=2e-4)), \
        f"f32 path max abs diff {float(jnp.max(jnp.abs(out_f32 - ref)))}"

    # Default fast path (bf16 MXU operands, f32 accumulation): looser tolerance.
    fwd = jax.jit(res_block_sqex)
    out = jax.block_until_ready(fwd(x, params))
    assert bool(jnp.all(jnp.isfinite(out)))
    assert bool(jnp.allclose(out, ref, atol=1e-1, rtol=1e-1)), \
        f"bf16 path max abs diff {float(jnp.max(jnp.abs(out - ref)))}"

    print("KERNEL_OK")
</pallas_src>

<mosaic_0001>
module attributes {stable_mosaic.version = 11 : i64} {
  func.func @_bn_relu_conv_kernel(%arg0: i32, %arg1: i32, %arg2: memref<1x1x10x256xf32, #tpu.memory_space<vmem>>, %arg3: memref<1x256xf32, #tpu.memory_space<vmem>>, %arg4: memref<1x256xf32, #tpu.memory_space<vmem>>, %arg5: memref<3x256x256xf32, #tpu.memory_space<vmem>>, %arg6: memref<1x8x256xf32, #tpu.memory_space<vmem>>, %arg7: memref<1x1x2x256xf32, #tpu.memory_space<vmem>>) attributes {dimension_semantics = [#tpu.dimension_semantics<parallel>, #tpu.dimension_semantics<parallel>], iteration_bounds = array<i64: 2, 1>, scalar_prefetch = 0 : i64, scratch_operands = 0 : i64, tpu.core_type = #tpu.core_type<tc>, window_params = [{transform_indices = @transform_0, window_bounds = array<i64: 1, 1, 10, 256>}, {pipeline_mode = #tpu.pipeline_mode<synchronous>, transform_indices = @transform_1, window_bounds = array<i64: 1, 256>}, {pipeline_mode = #tpu.pipeline_mode<synchronous>, transform_indices = @transform_2, window_bounds = array<i64: 1, 256>}, {pipeline_mode = #tpu.pipeline_mode<synchronous>, transform_indices = @transform_3, window_bounds = array<i64: 3, 256, 256>}, {transform_indices = @transform_4, window_bounds = array<i64: 1, 8, 256>}, {transform_indices = @transform_5, window_bounds = array<i64: 1, 1, 2, 256>}]} {
    %c0 = arith.constant 0 : index
    %c0_0 = arith.constant 0 : index
    %c0_1 = arith.constant 0 : index
    %c0_2 = arith.constant 0 : index
    %0 = vector.load %arg2[%c0, %c0_0, %c0_1, %c0_2] : memref<1x1x10x256xf32, #tpu.memory_space<vmem>>, vector<1x1x10x256xf32>
    %1 = vector.shape_cast %0 : vector<1x1x10x256xf32> to vector<10x256xf32>
    %c0_3 = arith.constant 0 : index
    %c0_4 = arith.constant 0 : index
    %2 = vector.load %arg3[%c0_3, %c0_4] : memref<1x256xf32, #tpu.memory_space<vmem>>, vector<1x256xf32>
    %3 = vector.broadcast %2 : vector<1x256xf32> to vector<10x256xf32>
    %4 = arith.mulf %1, %3 : vector<10x256xf32>
    %c0_5 = arith.constant 0 : index
    %c0_6 = arith.constant 0 : index
    %5 = vector.load %arg4[%c0_5, %c0_6] : memref<1x256xf32, #tpu.memory_space<vmem>>, vector<1x256xf32>
    %6 = vector.broadcast %5 : vector<1x256xf32> to vector<10x256xf32>
    %7 = arith.addf %4, %6 : vector<10x256xf32>
    %cst = arith.constant 0.000000e+00 : f32
    %8 = vector.broadcast %cst : f32 to vector<10x256xf32>
    %9 = arith.maximumf %7, %8 : vector<10x256xf32>
    %10 = tpu.iota {dimensions = array<i32: 0>} : vector<10x1xi32>
    %c0_i32 = arith.constant 0 : i32
    %11 = vector.broadcast %c0_i32 : i32 to vector<10x1xi32>
    %12 = arith.cmpi sgt, %10, %11 : vector<10x1xi32>
    %c0_i32_7 = arith.constant 0 : i32
    %13 = arith.cmpi sgt, %arg1, %c0_i32_7 : i32
    %14 = vector.broadcast %13 : i1 to vector<10x1xi1>
    %15 = arith.ori %12, %14 : vector<10x1xi1>
    %c9_i32 = arith.constant 9 : i32
    %16 = vector.broadcast %c9_i32 : i32 to vector<10x1xi32>
    %17 = arith.cmpi slt, %10, %16 : vector<10x1xi32>
    %c0_i32_8 = arith.constant 0 : i32
    %18 = arith.cmpi slt, %arg1, %c0_i32_8 : i32
    %19 = vector.broadcast %18 : i1 to vector<10x1xi1>
    %20 = arith.ori %17, %19 : vector<10x1xi1>
    %21 = arith.andi %15, %20 : vector<10x1xi1>
    %cst_9 = arith.constant 0.000000e+00 : f32
    %22 = vector.shape_cast %21 : vector<10x1xi1> to vector<10x1xi1>
    %23 = vector.broadcast %22 : vector<10x1xi1> to vector<10x256xi1>
    %24 = vector.broadcast %cst_9 : f32 to vector<10x256xf32>
    %25 = arith.select %23, %9, %24 : vector<10x256xi1>, vector<10x256xf32>
    %26 = vector.extract_strided_slice %25 {offsets = [0, 0], sizes = [8, 256], strides = [1, 1]} : vector<10x256xf32> to vector<8x256xf32>
    %c0_10 = arith.constant 0 : index
    %c0_11 = arith.constant 0 : index
    %c0_12 = arith.constant 0 : index
    %27 = vector.load %arg5[%c0_10, %c0_11, %c0_12] : memref<3x256x256xf32, #tpu.memory_space<vmem>>, vector<1x256x256xf32>
    %28 = vector.shape_cast %27 : vector<1x256x256xf32> to vector<256x256xf32>
    %cst_13 = arith.constant dense<0.000000e+00> : vector<8x256xf32>
    %29 = tpu.matmul %26, %28, %cst_13 {dimension_numbers = #tpu.dot_dimension_numbers<[1], [0], [0], [1], [0, 0, 1, 1], [], []>} : vector<8x256xf32>, vector<256x256xf32>, vector<8x256xf32> -> vector<8x256xf32>
    %30 = vector.extract_strided_slice %25 {offsets = [1, 0], sizes = [8, 256], strides = [1, 1]} : vector<10x256xf32> to vector<8x256xf32>
    %c1 = arith.constant 1 : index
    %c0_14 = arith.constant 0 : index
    %c0_15 = arith.constant 0 : index
    %31 = vector.load %arg5[%c1, %c0_14, %c0_15] : memref<3x256x256xf32, #tpu.memory_space<vmem>>, vector<1x256x256xf32>
    %32 = vector.shape_cast %31 : vector<1x256x256xf32> to vector<256x256xf32>
    %cst_16 = arith.constant dense<0.000000e+00> : vector<8x256xf32>
    %33 = tpu.matmul %30, %32, %cst_16 {dimension_numbers = #tpu.dot_dimension_numbers<[1], [0], [0], [1], [0, 0, 1, 1], [], []>} : vector<8x256xf32>, vector<256x256xf32>, vector<8x256xf32> -> vector<8x256xf32>
    %34 = arith.addf %29, %33 : vector<8x256xf32>
    %35 = vector.extract_strided_slice %25 {offsets = [2, 0], sizes = [8, 256], strides = [1, 1]} : vector<10x256xf32> to vector<8x256xf32>
    %c2 = arith.constant 2 : index
    %c0_17 = arith.constant 0 : index
    %c0_18 = arith.constant 0 : index
    %36 = vector.load %arg5[%c2, %c0_17, %c0_18] : memref<3x256x256xf32, #tpu.memory_space<vmem>>, vector<1x256x256xf32>
    %37 = vector.shape_cast %36 : vector<1x256x256xf32> to vector<256x256xf32>
    %cst_19 = arith.constant dense<0.000000e+00> : vector<8x256xf32>
    %38 = tpu.matmul %35, %37, %cst_19 {dimension_numbers = #tpu.dot_dimension_numbers<[1], [0], [0], [1], [0, 0, 1, 1], [], []>} : vector<8x256xf32>, vector<256x256xf32>, vector<8x256xf32> -> vector<8x256xf32>
    %39 = arith.addf %34, %38 : vector<8x256xf32>
    %c0_20 = arith.constant 0 : index
    %c0_21 = arith.constant 0 : index
    %c0_22 = arith.constant 0 : index
    %40 = vector.load %arg6[%c0_20, %c0_21, %c0_22] : memref<1x8x256xf32, #tpu.memory_space<vmem>>, vector<1x8x256xf32>
    %41 = vector.shape_cast %40 : vector<1x8x256xf32> to vector<8x256xf32>
    %42 = vector.shape_cast %39 : vector<8x256xf32> to vector<1x8x256xf32>
    tpu.vector_store %arg6[%c0_20, %c0_21, %c0_22], %42 {strides = array<i32>} : memref<1x8x256xf32, #tpu.memory_space<vmem>>, vector<1x8x256xf32>,
    %cst_23 = arith.constant dense<0.000000e+00> : vector<256xf32>
    %43 = vector.multi_reduction <add>, %39, %cst_23 [0] : vector<8x256xf32> to vector<256xf32>
    %44 = vector.shape_cast %43 : vector<256xf32> to vector<1x256xf32>
    %45 = arith.mulf %39, %39 : vector<8x256xf32>
    %cst_24 = arith.constant dense<0.000000e+00> : vector<256xf32>
    %46 = vector.multi_reduction <add>, %45, %cst_24 [0] : vector<8x256xf32> to vector<256xf32>
    %47 = vector.shape_cast %46 : vector<256xf32> to vector<1x256xf32>
    %48 = tpu.concatenate %44, %47 in 0 : vector<1x256xf32>, vector<1x256xf32> -> vector<2x256xf32>
    %c0_25 = arith.constant 0 : index
    %c0_26 = arith.constant 0 : index
    %c0_27 = arith.constant 0 : index
    %c0_28 = arith.constant 0 : index
    %49 = vector.load %arg7[%c0_25, %c0_26, %c0_27, %c0_28] : memref<1x1x2x256xf32, #tpu.memory_space<vmem>>, vector<1x1x2x256xf32>
    %50 = vector.shape_cast %49 : vector<1x1x2x256xf32> to vector<2x256xf32>
    %51 = vector.shape_cast %48 : vector<2x256xf32> to vector<1x1x2x256xf32>
    tpu.vector_store %arg7[%c0_25, %c0_26, %c0_27, %c0_28], %51 {strides = array<i32>} : memref<1x1x2x256xf32, #tpu.memory_space<vmem>>, vector<1x1x2x256xf32>,
    return
  }
  func.func @transform_0(%arg0: i32, %arg1: i32) -> (i32, i32, i32, i32) {
    %c0_i32 = arith.constant 0 : i32
    %c0_i32_0 = arith.constant 0 : i32
    %c0_i32_1 = arith.constant 0 : i32
    return %arg0, %arg1, %c0_i32, %c0_i32_0 : i32, i32, i32, i32
  }
  func.func @transform_1(%arg0: i32, %arg1: i32) -> (i32, i32) {
    %c0_i32 = arith.constant 0 : i32
    %c0_i32_0 = arith.constant 0 : i32
    %c0_i32_1 = arith.constant 0 : i32
    return %c0_i32, %c0_i32_0 : i32, i32
  }
  func.func @transform_2(%arg0: i32, %arg1: i32) -> (i32, i32) {
    %c0_i32 = arith.constant 0 : i32
    %c0_i32_0 = arith.constant 0 : i32
    %c0_i32_1 = arith.constant 0 : i32
    return %c0_i32, %c0_i32_0 : i32, i32
  }
  func.func @transform_3(%arg0: i32, %arg1: i32) -> (i32, i32, i32) {
    %c0_i32 = arith.constant 0 : i32
    %c0_i32_0 = arith.constant 0 : i32
    %c0_i32_1 = arith.constant 0 : i32
    %c0_i32_2 = arith.constant 0 : i32
    return %c0_i32, %c0_i32_0, %c0_i32_1 : i32, i32, i32
  }
  func.func @transform_4(%arg0: i32, %arg1: i32) -> (i32, i32, i32) {
    %c0_i32 = arith.constant 0 : i32
    %c0_i32_0 = arith.constant 0 : i32
    return %arg0, %arg1, %c0_i32 : i32, i32, i32
  }
  func.func @transform_5(%arg0: i32, %arg1: i32) -> (i32, i32, i32, i32) {
    %c0_i32 = arith.constant 0 : i32
    %c0_i32_0 = arith.constant 0 : i32
    %c0_i32_1 = arith.constant 0 : i32
    return %arg0, %arg1, %c0_i32, %c0_i32_0 : i32, i32, i32, i32
  }
}

module attributes {stable_mosaic.version = 11 : i64} {
  func.func @_sqex_residual_kernel(%arg0: i32, %arg1: i32, %arg2: memref<1x8x256xf32, #tpu.memory_space<vmem>>, %arg3: memref<1x8x256xf32, #tpu.memory_space<vmem>>, %arg4: memref<1x8x32xf32, #tpu.memory_space<vmem>>, %arg5: memref<32x128xf32, #tpu.memory_space<vmem>>, %arg6: memref<128x32xf32, #tpu.memory_space<vmem>>, %arg7: memref<1x8x256xf32, #tpu.memory_space<vmem>>) attributes {dimension_semantics = [#tpu.dimension_semantics<parallel>, #tpu.dimension_semantics<parallel>], iteration_bounds = array<i64: 2, 1>, scalar_prefetch = 0 : i64, scratch_operands = 0 : i64, tpu.core_type = #tpu.core_type<tc>, window_params = [{transform_indices = @transform_0, window_bounds = array<i64: 1, 8, 256>}, {transform_indices = @transform_1, window_bounds = array<i64: 1, 8, 256>}, {transform_indices = @transform_2, window_bounds = array<i64: 1, 8, 32>}, {pipeline_mode = #tpu.pipeline_mode<synchronous>, transform_indices = @transform_3, window_bounds = array<i64: 32, 128>}, {pipeline_mode = #tpu.pipeline_mode<synchronous>, transform_indices = @transform_4, window_bounds = array<i64: 128, 32>}, {transform_indices = @transform_5, window_bounds = array<i64: 1, 8, 256>}]} {
    %c0 = arith.constant 0 : index
    %c0_0 = arith.constant 0 : index
    %c0_1 = arith.constant 0 : index
    %0 = vector.load %arg4[%c0, %c0_0, %c0_1] : memref<1x8x32xf32, #tpu.memory_space<vmem>>, vector<1x8x32xf32>
    %1 = vector.shape_cast %0 : vector<1x8x32xf32> to vector<8x32xf32>
    %c0_2 = arith.constant 0 : index
    %c0_3 = arith.constant 0 : index
    %2 = vector.load %arg5[%c0_2, %c0_3] : memref<32x128xf32, #tpu.memory_space<vmem>>, vector<32x128xf32>
    %cst = arith.constant dense<0.000000e+00> : vector<8x128xf32>
    %3 = tpu.matmul %1, %2, %cst {dimension_numbers = #tpu.dot_dimension_numbers<[1], [0], [0], [1], [0, 0, 1, 1], [], []>} : vector<8x32xf32>, vector<32x128xf32>, vector<8x128xf32> -> vector<8x128xf32>
    %cst_4 = arith.constant 0.000000e+00 : f32
    %4 = vector.broadcast %cst_4 : f32 to vector<8x128xf32>
    %5 = arith.maximumf %3, %4 : vector<8x128xf32>
    %c0_5 = arith.constant 0 : index
    %c0_6 = arith.constant 0 : index
    %6 = vector.load %arg6[%c0_5, %c0_6] : memref<128x32xf32, #tpu.memory_space<vmem>>, vector<128x32xf32>
    %cst_7 = arith.constant dense<0.000000e+00> : vector<8x32xf32>
    %7 = tpu.matmul %5, %6, %cst_7 {dimension_numbers = #tpu.dot_dimension_numbers<[1], [0], [0], [1], [0, 0, 1, 1], [], []>} : vector<8x128xf32>, vector<128x32xf32>, vector<8x32xf32> -> vector<8x32xf32>
    %cst_8 = arith.constant 0.000000e+00 : f32
    %8 = vector.broadcast %cst_8 : f32 to vector<8x32xf32>
    %9 = arith.subf %8, %7 : vector<8x32xf32>
    %10 = math.exp %9 : vector<8x32xf32>
    %cst_9 = arith.constant 1.000000e+00 : f32
    %11 = vector.broadcast %cst_9 : f32 to vector<8x32xf32>
    %12 = arith.addf %11, %10 : vector<8x32xf32>
    %13 = tpu.reciprocal %12 : vector<8x32xf32> -> vector<8x32xf32>
    %14 = vector.extract_strided_slice %13 {offsets = [0, 0], sizes = [1, 32], strides = [1, 1]} : vector<8x32xf32> to vector<1x32xf32>
    %15 = tpu.concatenate %14, %14, %14, %14, %14, %14, %14, %14 in 1 : vector<1x32xf32>, vector<1x32xf32>, vector<1x32xf32>, vector<1x32xf32>, vector<1x32xf32>, vector<1x32xf32>, vector<1x32xf32>, vector<1x32xf32> -> vector<1x256xf32>
    %c0_10 = arith.constant 0 : index
    %c0_11 = arith.constant 0 : index
    %c0_12 = arith.constant 0 : index
    %16 = vector.load %arg2[%c0_10, %c0_11, %c0_12] : memref<1x8x256xf32, #tpu.memory_space<vmem>>, vector<1x8x256xf32>
    %17 = vector.shape_cast %16 : vector<1x8x256xf32> to vector<8x256xf32>
    %c0_13 = arith.constant 0 : index
    %c0_14 = arith.constant 0 : index
    %c0_15 = arith.constant 0 : index
    %18 = vector.load %arg3[%c0_13, %c0_14, %c0_15] : memref<1x8x256xf32, #tpu.memory_space<vmem>>, vector<1x8x256xf32>
    %19 = vector.shape_cast %18 : vector<1x8x256xf32> to vector<8x256xf32>
    %20 = vector.broadcast %15 : vector<1x256xf32> to vector<8x256xf32>
    %21 = arith.mulf %19, %20 : vector<8x256xf32>
    %22 = arith.addf %17, %21 : vector<8x256xf32>
    %c0_16 = arith.constant 0 : index
    %c0_17 = arith.constant 0 : index
    %c0_18 = arith.constant 0 : index
    %23 = vector.load %arg7[%c0_16, %c0_17, %c0_18] : memref<1x8x256xf32, #tpu.memory_space<vmem>>, vector<1x8x256xf32>
    %24 = vector.shape_cast %23 : vector<1x8x256xf32> to vector<8x256xf32>
    %25 = vector.shape_cast %22 : vector<8x256xf32> to vector<1x8x256xf32>
    tpu.vector_store %arg7[%c0_16, %c0_17, %c0_18], %25 {strides = array<i32>} : memref<1x8x256xf32, #tpu.memory_space<vmem>>, vector<1x8x256xf32>,
    return
  }
  func.func @transform_0(%arg0: i32, %arg1: i32) -> (i32, i32, i32) {
    %c0_i32 = arith.constant 0 : i32
    %c0_i32_0 = arith.constant 0 : i32
    return %arg0, %arg1, %c0_i32 : i32, i32, i32
  }
  func.func @transform_1(%arg0: i32, %arg1: i32) -> (i32, i32, i32) {
    %c0_i32 = arith.constant 0 : i32
    %c0_i32_0 = arith.constant 0 : i32
    return %arg0, %arg1, %c0_i32 : i32, i32, i32
  }
  func.func @transform_2(%arg0: i32, %arg1: i32) -> (i32, i32, i32) {
    %c0_i32 = arith.constant 0 : i32
    %c0_i32_0 = arith.constant 0 : i32
    %c0_i32_1 = arith.constant 0 : i32
    return %arg0, %c0_i32, %c0_i32_0 : i32, i32, i32
  }
  func.func @transform_3(%arg0: i32, %arg1: i32) -> (i32, i32) {
    %c0_i32 = arith.constant 0 : i32
    %c0_i32_0 = arith.constant 0 : i32
    %c0_i32_1 = arith.constant 0 : i32
    return %c0_i32, %c0_i32_0 : i32, i32
  }
  func.func @transform_4(%arg0: i32, %arg1: i32) -> (i32, i32) {
    %c0_i32 = arith.constant 0 : i32
    %c0_i32_0 = arith.constant 0 : i32
    %c0_i32_1 = arith.constant 0 : i32
    return %c0_i32, %c0_i32_0 : i32, i32
  }
  func.func @transform_5(%arg0: i32, %arg1: i32) -> (i32, i32, i32) {
    %c0_i32 = arith.constant 0 : i32
    %c0_i32_0 = arith.constant 0 : i32
    return %arg0, %arg1, %c0_i32 : i32, i32, i32
  }
}

</mosaic_0001>

<bundles_post_ra>
// kernel: tile.23
= control target key start
LH: loop header
LB: loop body
LE: loop exit
PB: predicated region body
PF: predicated region fallthrough
CT: control target
= control target key end

     0   :  { %s22_s0 = inlined_call_operand.vmem [shape: f32[32], index: 0, kind: input, shape index: {}]   ;;  %s23_s1 = inlined_call_operand.vmem [shape: f32[8,32], index: 1, kind: output, shape index: {}]  }
   0x1   :  { %v4_v0 = vld [vmem:[%s22_s0] ss:$0 sm:$0xff] }
   0x2   :  { %5 = vst [vmem:[%s23_s1] sm:$0xff] %v4_v0 }

// kernel: tile.24
= control target key start
LH: loop header
LB: loop body
LE: loop exit
PB: predicated region body
PF: predicated region fallthrough
CT: control target
= control target key end

     0   :  { %s7_s6 = smov 3  ;;  %s46_s9 = smov 96   ;;  %vm4_vm0 = vcmask 261120   ;;  %vm11_vm1 = vcmask 1048320   ;;  %vm18_vm2 = vcmask 785920   ;;  %vm25_vm3 = vcmask 523520   ;;  %s77_s0 = inlined_call_operand.vmem [shape: f32[8,32], index: 0, kind: input, shape index: {}]   ;;  %s78_s1 = inlined_call_operand.vmem [shape: f32[1,256], index: 1, kind: output, shape index: {}]  }
   0x1   :  { %v39_v0 = vld [vmem:[%s77_s0 + $0x3] ss:$4 sm:%s7_s6]   ;;  %s21_s10 = smov 3  ;;  %s14_s13 = smov 3 }
   0x2   :  { %9 = vrot.lane.b32.xlu0 %v39_v0, %s46_s9  ;;  %v41_v1 = vld [vmem:[%s77_s0 + $0x1] ss:$4 sm:%s21_s10]   ;;  %s47_s14 = smov 32   ;;  %s48_s17 = smov 64  }
   0x3   :  { %23 = vrot.lane.b32.xlu1 %v41_v1, %s47_s14  ;;  %v40_v2 = vld [vmem:[%s77_s0 + $0x2] ss:$4 sm:%s14_s13]   ;;  %s2_s18 = smov 3 }
   0x4   :  { %v3_v3 = vld [vmem:[%s77_s0] ss:$4 sm:%s2_s18]  }
   0x5   :  { %5 = vst.msk [vmem:[#allocation0] ss:$8 sm:$0x3] %vm4_vm0, %v3_v3  }
   0xa   :  { %16 = vrot.lane.b32.xlu0 %v40_v2, %s48_s17 }
  0x74   :  { %v10_v4 = vpop.permute.xlu0 %9  }
  0x75   :  { %12 = vst.msk [vmem:[#allocation0] ss:$8 sm:$0x3] %vm11_vm1, %v10_v4   ;;  %v24_v5 = vpop.permute.xlu1 %23  }
  0x7c   :  { %v17_v6 = vpop.permute.xlu0 %16  }
  0x7d   :  { %19 = vst.msk [vmem:[#allocation0] ss:$8 sm:$0x3] %vm18_vm2, %v17_v6  }
  0x7e   :  { %26 = vst.msk [vmem:[#allocation0] ss:$8 sm:$0x3] %vm25_vm3, %v24_v5  }
  0x85   :  { %v29_v7 = vld [vmem:[#allocation0] sm:$0x1]  ;;  %v34_v8 = vld [vmem:[#allocation0 + $0x8] sm:$0x1] }
  0x86   :  { %32 = vst [vmem:[%s78_s1] sm:$0x1] %v29_v7 }
  0x87   :  { %42 = vst [vmem:[%s78_s1 + $0x1] sm:$0x1] %v34_v8 }

// kernel: _lambda_.5
= control target key start
LH: loop header
LB: loop body
LE: loop exit
PB: predicated region body
PF: predicated region fallthrough
CT: control target
= control target key end

     0   :  { %s653_s18 = smov 0   ;;  %s655_s19 = smov 0   ;;  %s758_s0 = inlined_call_operand.vmem [shape: f32[2,8,256], index: 0, kind: input, shape index: {}, may-alias: {0,5}]   ;;  %s759_s1 = inlined_call_operand.vmem [shape: f32[2,8,256], index: 1, kind: input, shape index: {}]   ;;  %s760_s2 = inlined_call_operand.vmem [shape: f32[2,8,32], index: 2, kind: input, shape index: {}]   ;;  %s761_s3 = inlined_call_operand.vmem [shape: f32[32,128], index: 3, kind: input, shape index: {}]   ;;  %s762_s4 = inlined_call_operand.vmem [shape: f32[128,32], index: 4, kind: input, shape index: {}]   ;;  %s763_s5 = inlined_call_operand.vmem [shape: f32[2,8,256], index: 5, kind: output, shape index: {}, may-alias: {0,5}]  }
   0x1   :  { %s657_s20 = smov 0  }
   0x2 LB: > { %s27_s21 = sadd.s32 1, %s614_s19  ;;  %p551_p0 = scmp.ge.s32.totalorder %s618_s20, 1  ;;  %s618_s20 = sphi %s657_s20, %s15_s20   ;;  %s614_s19 = sphi %s655_s19, %s765_s19   ;;  %s610_s18 = sphi %s653_s18, %s764_s18  }
   0x3   : > { %p29_p1 = scmp.ge.s32.totalorder %s27_s21, 2  ;;  %p232_p2 = scmp.lt.s32.totalorder %s618_s20, 3 }
   0x5   : > { %s767_s21 = smov (%p29_p1, %s27_s21), 0  ;;  %p233_p3 = pnand %p551_p0, %p232_p2 }
   0x6   : > { %p281_p4 = scmp.lt.s32.totalorder (!%p233_p3), %s610_s18, 1  ;;  %s620_s24 = smov (!%p233_p3), 96  }
   0x7   : > { %236 = sbr.rel (%p233_p3) target bundleno = 437 (0x1b5), region = 40  ;;  %s621_s25 = smov (!%p233_p3), 32  }
   0x8   : > { %s622_s26 = smov (!%p233_p3), 64  }
   0xc   : > { %v316_v0 = vld [vmem:[%s761_s3 + $0x18] sm:$0xff]  ;;  %v315_v1 = vld [vmem:[%s761_s3 + $0x10] sm:$0xff]  ;;  %v314_v4 = vld [vmem:[%s761_s3 + $0x8] sm:$0xff]  ;;  %s769_s18 = smov (!%p281_p4, %s610_s18), 1  ;;  %vm317_vm0 = vcmask 261120   ;;  %vm407_vm5 = vcmask 523264  }
   0xd   : > { %333 = vmatpush.msra.mxu0 %v316_v0  ;;  %v357_v2 = vld [vmem:[%s762_s4 + $0x78] sm:$0xff]  ;;  %v356_v3 = vld [vmem:[%s762_s4 + $0x70] sm:$0xff]  ;;  %v355_v5 = vld [vmem:[%s762_s4 + $0x68] sm:$0xff]  ;;  %s556_s11 = sshll.u32 %s769_s18, 3  ;;  %s562_s27 = sshll.u32 %s769_s18, 4  ;;  %vm409_vm6 = vcmask 785408  }
   0xe   : > { %358 = vmatpush.msra.mxu1 %v357_v2  ;;  %v313_v6 = vld [vmem:[%s761_s3] sm:$0xff]  ;;  %s302_s14 = scalar_lea.vmem %s760_s2, %s556_s11  ;;  %v353_v9 = vld [vmem:[%s762_s4 + $0x58] sm:$0xff]  ;;  %v352_v10 = vld [vmem:[%s762_s4 + $0x50] sm:$0xff]  ;;  %s298_s30 = scalar_lea.vmem %s759_s1, %s562_s27 }
   0xf   : > { %334 = vmatpush.msra.mxu0 %v315_v1  ;;  %v354_v7 = vld [vmem:[%s762_s4 + $0x60] sm:$0xff]  ;;  %v351_v11 = vld [vmem:[%s762_s4 + $0x48] sm:$0xff]  ;;  %v349_v13 = vld [vmem:[%s762_s4 + $0x38] sm:$0xff]  ;;  %s289_s8 = scalar_lea.vmem %s758_s0, %s562_s27  ;;  %s311_s10 = scalar_lea.vmem %s763_s5, %s562_s27 }
  0x10   : > { %359 = vmatpush.msra.mxu1 %v356_v3  ;;  %v312_v8 = vld [vmem:[%s302_s14] sm:$0xff]  ;;  %v348_v14 = vld [vmem:[%s762_s4 + $0x30] sm:$0xff]  ;;  %v347_v15 = vld [vmem:[%s762_s4 + $0x28] sm:$0xff] }
  0x11   : > { %335 = vmatpush.msra.mxu0 %v314_v4  ;;  %v350_v12 = vld [vmem:[%s762_s4 + $0x40] sm:$0xff]  ;;  %v345_v17 = vld [vmem:[%s762_s4 + $0x18] sm:$0xff]  ;;  %v344_v18 = vld [vmem:[%s762_s4 + $0x10] sm:$0xff] }
  0x12   : > { %360 = vmatpush.msra.mxu1 %v355_v5  ;;  %v346_v16 = vld [vmem:[%s762_s4 + $0x20] sm:$0xff]  ;;  %v343_v19 = vld [vmem:[%s762_s4 + $0x8] sm:$0xff] }
  0x13   : > { %336 = vmatpush.msra.mxu0 %v313_v6  ;;  %v342_v20 = vld [vmem:[%s762_s4] sm:$0xff]  ;;  %v414_v45 = vld [vmem:[%s298_s30 + $0x8] sm:$0xff] }
  0x14   : > { %559 = vmatmul.msk.f32.vlgmr.msra.gmra.mxu0 %vm317_vm0, %v312_v8  ;;  %361 = vmatpush.msra.mxu1 %v354_v7  ;;  %v413_v44 = vld [vmem:[%s298_s30] sm:$0xff]  ;;  %v412_v48 = vld [vmem:[%s289_s8 + $0x8] sm:$0xff] }
  0x15   : > { %v411_v47 = vld [vmem:[%s289_s8] sm:$0xff] }
  0x16   : > { %362 = vmatpush.msra.mxu1 %v353_v9 }
  0x18   : > { %363 = vmatpush.msra.mxu1 %v352_v10 }
  0x1a   : > { %364 = vmatpush.msra.mxu1 %v351_v11 }
  0x1c   : > { %365 = vmatpush.msra.mxu1 %v350_v12 }
  0x1e   : > { %366 = vmatpush.msra.mxu1 %v349_v13 }
  0x20   : > { %367 = vmatpush.msra.mxu1 %v348_v14 }
  0x22   : > { %368 = vmatpush.msra.mxu1 %v347_v15 }
  0x24   : > { %369 = vmatpush.msra.mxu1 %v346_v16 }
  0x26   : > { %370 = vmatpush.msra.mxu1 %v345_v17 }
  0x28   : > { %371 = vmatpush.msra.mxu1 %v344_v18 }
  0x2a   : > { %372 = vmatpush.msra.mxu1 %v343_v19 }
  0x2c   : > { %373 = vmatpush.msra.mxu1 %v342_v20 }
  0x91   : > { %v338_v21 = vpop.f32.mrf.mxu0 }
  0x92   : > { %v341_v22 = vmax.f32 %v338_v21, 0.0 }
  0x94   : > { %374 = vmatmul.f32.vlgmr.msra.gmra.mxu1 %v341_v22 }
 0x111   : > { %v375_v23 = vpop.f32.mrf.mxu1 }
 0x112   : > { %v378_v24 = vsub.f32 0.0, %v375_v23 }
 0x114   : > { %v379_v25 = vmul.f32 1.442695, %v378_v24 }
 0x116   : > { %592 = vpow2.f32 %v379_v25 }
 0x11c   : > { %v593_v26 = vpop.eup %592 }
 0x11d   : > { %v381_v27 = vadd.f32 1.0, %v593_v26 }
 0x11f   : > { %594 = vrcp.f32 %v381_v27  ;;  %v393_v31 = vand.u32 2147483648, %v381_v27  ;;  %v391_v33 = vand.u32 2147483647, %v381_v27  ;;  %vm387_vm2 = vweird.f32 %v381_v27 }
 0x121   : > { %v394_v35 = vor.u32 1.1754944e-38, %v393_v31  ;;  %vm392_vm4 = vcmp.eq.f32.partialorder %v391_v33, 8.507059e+37 }
 0x125   : > { %v595_v28 = vpop.eup %594 }
 0x126   : > { %v383_v29 = vmul.f32 %v595_v28, %v381_v27  ;;  %vm388_vm1 = vweird.f32 %v595_v28 }
 0x127   : > { %vm389_vm3 = vmor %vm387_vm2, %vm388_vm1 }
 0x128   : > { %v384_v30 = vsub.f32 1.0, %v383_v29 }
 0x12a   : > { %v385_v32 = vmul.f32 %v595_v28, %v384_v30 }
 0x12c   : > { %v386_v34 = vadd.f32 %v595_v28, %v385_v32 }
 0x12e   : > { %v390_v36 = vsel %vm389_vm3, %v595_v28, %v386_v34 }
 0x12f   : > { %v395_v37 = vsel %vm392_vm4, %v394_v35, %v390_v36 }
 0x130   : > { %403 = vrot.lane.b32.xlu1 %v395_v37, %s620_s24  ;;  %397 = vrot.lane.b32.xlu0 %v395_v37, %s621_s25 }
 0x138   : > { %400 = vrot.lane.b32.xlu0 %v395_v37, %s622_s26 }
 0x1a2   : > { %v398_v38 = vpop.permute.xlu0 %397  ;;  %v404_v41 = vpop.permute.xlu1 %403 }
 0x1a3   : > { %v406_v39 = vsel %vm317_vm0, %v395_v37, %v398_v38 }
 0x1aa   : > { %v401_v40 = vpop.permute.xlu0 %400 }
 0x1ab   : > { %v408_v42 = vsel %vm407_vm5, %v406_v39, %v401_v40 }
 0x1ac   : > { %v410_v43 = vsel %vm409_vm6, %v408_v42, %v404_v41 }
 0x1ad   : > { %v415_v46 = vperm.slane %v410_v43, 0 }
 0x1af   : > { %v416_v49 = vmul.f32 %v415_v46, %v413_v44  ;;  %v417_v50 = vmul.f32 %v415_v46, %v414_v45 }
 0x1b1   : > { %v418_v51 = vadd.f32 %v416_v49, %v411_v47  ;;  %v419_v52 = vadd.f32 %v417_v50, %v412_v48 }
 0x1b3   : > { %420 = vst [vmem:[%s311_s10] sm:$0xff] %v418_v51 }
 0x1b4   : > { %421 = vst [vmem:[%s311_s10 + $0x8] sm:$0xff] %v419_v52 }
 0x1b5 PF: > { %s15_s20 = sadd.s32 1, %s618_s20   ;;  %s764_s18 = smov %s614_s19 }
 0x1b6   : > { %p12_p5 = scmp.ge.s32.totalorder %s15_s20, 4   ;;  %s765_s19 = smov %s767_s21 }
 0x1b8   :  { %14 = sbr.rel (!%p12_p5) target bundleno = 2 (0x2), region = 76 }

// kernel: _lambda_.3
= control target key start
LH: loop header
LB: loop body
LE: loop exit
PB: predicated region body
PF: predicated region fallthrough
CT: control target
= control target key end

     0   :  { %s1208_s18 = smov 0   ;;  %s1210_s19 = smov 0   ;;  %s1889_s0 = inlined_call_operand.vmem [shape: f32[2,1,10,256], index: 0, kind: input, shape index: {}]   ;;  %s1890_s1 = inlined_call_operand.vmem [shape: f32[1,256], index: 1, kind: input, shape index: {}]   ;;  %s1891_s2 = inlined_call_operand.vmem [shape: f32[1,256], index: 2, kind: input, shape index: {}]   ;;  %s1892_s3 = inlined_call_operand.vmem [shape: f32[3,256,256], index: 3, kind: input, shape index: {}]   ;;  %s1893_s4 = inlined_call_operand.vmem [shape: f32[2,8,256], index: 4, kind: output, shape index: {0}]   ;;  %s1894_s5 = inlined_call_operand.vmem [shape: f32[2,1,2,256], index: 5, kind: output, shape index: {1}]  }
   0x1   :  { %s1212_s20 = smov 0  }
   0x2 LB: > { %s28_s21 = sadd.s32 1, %s1172_s19  ;;  %p986_p0 = scmp.ge.s32.totalorder %s1176_s20, 1  ;;  %s1176_s20 = sphi %s1212_s20, %s16_s20   ;;  %s1172_s19 = sphi %s1210_s19, %s1896_s19   ;;  %s1168_s18 = sphi %s1208_s18, %s1895_s18  }
   0x3   : > { %p30_p1 = scmp.ge.s32.totalorder %s28_s21, 2  ;;  %p212_p2 = scmp.lt.s32.totalorder %s1176_s20, 3 }
   0x5   : > { %s1898_s21 = smov (%p30_p1, %s28_s21), 0  ;;  %p213_p3 = pnand %p986_p0, %p212_p2 }
   0x6   : > { %p257_p4 = scmp.lt.s32.totalorder (!%p213_p3), %s1168_s18, 1 }
   0x7   : > { %216 = sbr.rel (%p213_p3) target bundleno = 269 (0x10d), region = 36 }
   0xc   : > { %v1023_v0 = vld [vmem:[%s1892_s3 + $0x2f0] sm:$0xff]  ;;  %v1024_v2 = vld [vmem:[%s1892_s3 + $0x2f8] sm:$0xff]  ;;  %v1021_v4 = vld [vmem:[%s1892_s3 + $0x2e0] sm:$0xff]  ;;  %s1900_s18 = smov (!%p257_p4, %s1168_s18), 1  ;;  %vm474_vm2 = vcmask 1046528   ;;  %vm708_vm3 = vcmask 1045504  }
   0xd   : > { %v1055_v1 = vld [vmem:[%s1892_s3 + $0x3f0] sm:$0xff]  ;;  %483 = vmatpush.msra.mxu0 %v1023_v0  ;;  %v1056_v3 = vld [vmem:[%s1892_s3 + $0x3f8] sm:$0xff]  ;;  %v1053_v5 = vld [vmem:[%s1892_s3 + $0x3e0] sm:$0xff]  ;;  %523 = vmatpush.msra.mxu2 %v1024_v2  ;;  %s1127_s11 = sshll.u32 %s1900_s18, 5  ;;  %s1129_s16 = sshll.u32 %s1900_s18, 2  ;;  %vm827_vm4 = vcmask 1040384  }
   0xe   : > { %503 = vmatpush.msra.mxu1 %v1055_v1  ;;  %543 = vmatpush.msra.mxu3 %v1056_v3  ;;  %v1022_v6 = vld [vmem:[%s1892_s3 + $0x2e8] sm:$0xff]  ;;  %v1019_v8 = vld [vmem:[%s1892_s3 + $0x2d0] sm:$0xff]  ;;  %v1020_v10 = vld [vmem:[%s1892_s3 + $0x2d8] sm:$0xff]  ;;  %s1466_s30 = scalar_lea.vmem %s1889_s0, %s1127_s11  ;;  %s1128_s11 = sshll.u32 %s1900_s18, 4  ;;  %vm833_vm5 = vcmask 1041408  }
   0xf   : > { %v1054_v7 = vld [vmem:[%s1892_s3 + $0x3e8] sm:$0xff]  ;;  %484 = vmatpush.msra.mxu0 %v1021_v4  ;;  %v1051_v9 = vld [vmem:[%s1892_s3 + $0x3d0] sm:$0xff]  ;;  %v1052_v11 = vld [vmem:[%s1892_s3 + $0x3d8] sm:$0xff]  ;;  %524 = vmatpush.msra.mxu2 %v1022_v6  ;;  %s274_s15 = scalar_lea.vmem %s1893_s4, %s1128_s11 }
  0x10   : > { %504 = vmatpush.msra.mxu1 %v1053_v5  ;;  %544 = vmatpush.msra.mxu3 %v1054_v7  ;;  %v1017_v12 = vld [vmem:[%s1892_s3 + $0x2c0] sm:$0xff]  ;;  %v1018_v14 = vld [vmem:[%s1892_s3 + $0x2c8] sm:$0xff]  ;;  %v1015_v16 = vld [vmem:[%s1892_s3 + $0x2b0] sm:$0xff] }
  0x11   : > { %v1049_v13 = vld [vmem:[%s1892_s3 + $0x3c0] sm:$0xff]  ;;  %485 = vmatpush.msra.mxu0 %v1019_v8  ;;  %v1050_v15 = vld [vmem:[%s1892_s3 + $0x3c8] sm:$0xff]  ;;  %525 = vmatpush.msra.mxu2 %v1020_v10  ;;  %v1047_v17 = vld [vmem:[%s1892_s3 + $0x3b0] sm:$0xff]  ;;  %v312_v10 = vlaneseq }
  0x12   : > { %505 = vmatpush.msra.mxu1 %v1051_v9  ;;  %545 = vmatpush.msra.mxu3 %v1052_v11  ;;  %v1016_v18 = vld [vmem:[%s1892_s3 + $0x2b8] sm:$0xff]  ;;  %v1013_v20 = vld [vmem:[%s1892_s3 + $0x2a0] sm:$0xff]  ;;  %v1014_v22 = vld [vmem:[%s1892_s3 + $0x2a8] sm:$0xff] }
  0x13   : > { %486 = vmatpush.msra.mxu0 %v1017_v12  ;;  %v1048_v19 = vld [vmem:[%s1892_s3 + $0x3b8] sm:$0xff]  ;;  %526 = vmatpush.msra.mxu2 %v1018_v14  ;;  %v1045_v21 = vld [vmem:[%s1892_s3 + $0x3a0] sm:$0xff]  ;;  %v1046_v23 = vld [vmem:[%s1892_s3 + $0x3a8] sm:$0xff] }
  0x14   : > { %506 = vmatpush.msra.mxu1 %v1049_v13  ;;  %546 = vmatpush.msra.mxu3 %v1050_v15  ;;  %v1011_v24 = vld [vmem:[%s1892_s3 + $0x290] sm:$0xff]  ;;  %v1012_v26 = vld [vmem:[%s1892_s3 + $0x298] sm:$0xff]  ;;  %v1009_v28 = vld [vmem:[%s1892_s3 + $0x280] sm:$0xff] }
  0x15   : > { %487 = vmatpush.msra.mxu0 %v1015_v16  ;;  %527 = vmatpush.msra.mxu2 %v1016_v18  ;;  %v1043_v25 = vld [vmem:[%s1892_s3 + $0x390] sm:$0xff]  ;;  %v1044_v27 = vld [vmem:[%s1892_s3 + $0x398] sm:$0xff]  ;;  %v1041_v29 = vld [vmem:[%s1892_s3 + $0x380] sm:$0xff] }
  0x16   : > { %507 = vmatpush.msra.mxu1 %v1047_v17  ;;  %547 = vmatpush.msra.mxu3 %v1048_v19  ;;  %v1010_v30 = vld [vmem:[%s1892_s3 + $0x288] sm:$0xff]  ;;  %v1007_v32 = vld [vmem:[%s1892_s3 + $0x270] sm:$0xff]  ;;  %v1008_v34 = vld [vmem:[%s1892_s3 + $0x278] sm:$0xff] }
  0x17   : > { %488 = vmatpush.msra.mxu0 %v1013_v20  ;;  %528 = vmatpush.msra.mxu2 %v1014_v22  ;;  %v1042_v31 = vld [vmem:[%s1892_s3 + $0x388] sm:$0xff]  ;;  %v1039_v33 = vld [vmem:[%s1892_s3 + $0x370] sm:$0xff]  ;;  %v1040_v35 = vld [vmem:[%s1892_s3 + $0x378] sm:$0xff]  ;;  %v1493_v22 = vshrl.u32 %v312_v10, 7 }
  0x18   : > { %508 = vmatpush.msra.mxu1 %v1045_v21  ;;  %548 = vmatpush.msra.mxu3 %v1046_v23  ;;  %v1005_v36 = vld [vmem:[%s1892_s3 + $0x260] sm:$0xff]  ;;  %v1006_v38 = vld [vmem:[%s1892_s3 + $0x268] sm:$0xff]  ;;  %v1003_v40 = vld [vmem:[%s1892_s3 + $0x250] sm:$0xff] }
  0x19   : > { %489 = vmatpush.msra.mxu0 %v1011_v24  ;;  %529 = vmatpush.msra.mxu2 %v1012_v26  ;;  %v1037_v37 = vld [vmem:[%s1892_s3 + $0x360] sm:$0xff]  ;;  %v1038_v39 = vld [vmem:[%s1892_s3 + $0x368] sm:$0xff]  ;;  %v1035_v41 = vld [vmem:[%s1892_s3 + $0x350] sm:$0xff]  ;;  %vm315_vm0 = vcmp.gt.s32.totalorder %v1493_v22, 0 }
  0x1a   : > { %509 = vmatpush.msra.mxu1 %v1043_v25  ;;  %549 = vmatpush.msra.mxu3 %v1044_v27  ;;  %v1004_v42 = vld [vmem:[%s1892_s3 + $0x258] sm:$0xff]  ;;  %v1001_v44 = vld [vmem:[%s1892_s3 + $0x240] sm:$0xff]  ;;  %v1002_v46 = vld [vmem:[%s1892_s3 + $0x248] sm:$0xff] }
  0x1b   : > { %490 = vmatpush.msra.mxu0 %v1009_v28  ;;  %530 = vmatpush.msra.mxu2 %v1010_v30  ;;  %v1036_v43 = vld [vmem:[%s1892_s3 + $0x358] sm:$0xff]  ;;  %v1033_v45 = vld [vmem:[%s1892_s3 + $0x340] sm:$0xff]  ;;  %v1034_v47 = vld [vmem:[%s1892_s3 + $0x348] sm:$0xff] }
  0x1c   : > { %510 = vmatpush.msra.mxu1 %v1041_v29  ;;  %550 = vmatpush.msra.mxu3 %v1042_v31  ;;  %v999_v48 = vld [vmem:[%s1892_s3 + $0x230] sm:$0xff]  ;;  %v1000_v50 = vld [vmem:[%s1892_s3 + $0x238] sm:$0xff]  ;;  %v997_v52 = vld [vmem:[%s1892_s3 + $0x220] sm:$0xff] }
  0x1d   : > { %491 = vmatpush.msra.mxu0 %v1007_v32  ;;  %531 = vmatpush.msra.mxu2 %v1008_v34  ;;  %v1031_v49 = vld [vmem:[%s1892_s3 + $0x330] sm:$0xff]  ;;  %v1032_v51 = vld [vmem:[%s1892_s3 + $0x338] sm:$0xff]  ;;  %v1029_v53 = vld [vmem:[%s1892_s3 + $0x320] sm:$0xff] }
  0x1e   : > { %511 = vmatpush.msra.mxu1 %v1039_v33  ;;  %551 = vmatpush.msra.mxu3 %v1040_v35  ;;  %v998_v54 = vld [vmem:[%s1892_s3 + $0x228] sm:$0xff]  ;;  %v995_v56 = vld [vmem:[%s1892_s3 + $0x210] sm:$0xff]  ;;  %v996_v58 = vld [vmem:[%s1892_s3 + $0x218] sm:$0xff] }
  0x1f   : > { %492 = vmatpush.msra.mxu0 %v1005_v36  ;;  %532 = vmatpush.msra.mxu2 %v1006_v38  ;;  %v1030_v55 = vld [vmem:[%s1892_s3 + $0x328] sm:$0xff]  ;;  %v1027_v57 = vld [vmem:[%s1892_s3 + $0x310] sm:$0xff]  ;;  %v1028_v59 = vld [vmem:[%s1892_s3 + $0x318] sm:$0xff] }
  0x20   : > { %512 = vmatpush.msra.mxu1 %v1037_v37  ;;  %552 = vmatpush.msra.mxu3 %v1038_v39  ;;  %v993_v60 = vld [vmem:[%s1892_s3 + $0x200] sm:$0xff]  ;;  %v994_v62 = vld [vmem:[%s1892_s3 + $0x208] sm:$0xff]  ;;  %v371_v0 = vld [vmem:[%s1892_s3 + $0xf0] sm:$0xff] }
  0x21   : > { %493 = vmatpush.msra.mxu0 %v1003_v40  ;;  %533 = vmatpush.msra.mxu2 %v1004_v42  ;;  %v1025_v61 = vld [vmem:[%s1892_s3 + $0x300] sm:$0xff]  ;;  %v1026_v63 = vld [vmem:[%s1892_s3 + $0x308] sm:$0xff]  ;;  %v403_v1 = vld [vmem:[%s1892_s3 + $0x1f0] sm:$0xff]  ;;  %v314_v40 = vadd.s32 8, %v1493_v22 }
  0x22   : > { %513 = vmatpush.msra.mxu1 %v1035_v41  ;;  %553 = vmatpush.msra.mxu3 %v1036_v43  ;;  %v372_v2 = vld [vmem:[%s1892_s3 + $0xf8] sm:$0xff]  ;;  %v369_v4 = vld [vmem:[%s1892_s3 + $0xe0] sm:$0xff]  ;;  %v370_v6 = vld [vmem:[%s1892_s3 + $0xe8] sm:$0xff] }
  0x23   : > { %494 = vmatpush.msra.mxu0 %v1001_v44  ;;  %534 = vmatpush.msra.mxu2 %v1002_v46  ;;  %v404_v3 = vld [vmem:[%s1892_s3 + $0x1f8] sm:$0xff]  ;;  %v401_v5 = vld [vmem:[%s1892_s3 + $0x1e0] sm:$0xff]  ;;  %v402_v7 = vld [vmem:[%s1892_s3 + $0x1e8] sm:$0xff]  ;;  %vm324_vm1 = vcmp.lt.s32.totalorder %v314_v40, 9 }
  0x24   : > { %514 = vmatpush.msra.mxu1 %v1033_v45  ;;  %554 = vmatpush.msra.mxu3 %v1034_v47  ;;  %v367_v8 = vld [vmem:[%s1892_s3 + $0xd0] sm:$0xff]  ;;  %v368_v11 = vld [vmem:[%s1892_s3 + $0xd8] sm:$0xff]  ;;  %v365_v13 = vld [vmem:[%s1892_s3 + $0xc0] sm:$0xff] }
  0x25   : > { %495 = vmatpush.msra.mxu0 %v999_v48  ;;  %535 = vmatpush.msra.mxu2 %v1000_v50  ;;  %v399_v9 = vld [vmem:[%s1892_s3 + $0x1d0] sm:$0xff]  ;;  %v400_v12 = vld [vmem:[%s1892_s3 + $0x1d8] sm:$0xff]  ;;  %v397_v14 = vld [vmem:[%s1892_s3 + $0x1c0] sm:$0xff] }
  0x26   : > { %515 = vmatpush.msra.mxu1 %v1031_v49  ;;  %555 = vmatpush.msra.mxu3 %v1032_v51  ;;  %v366_v15 = vld [vmem:[%s1892_s3 + $0xc8] sm:$0xff]  ;;  %v363_v17 = vld [vmem:[%s1892_s3 + $0xb0] sm:$0xff]  ;;  %v364_v19 = vld [vmem:[%s1892_s3 + $0xb8] sm:$0xff] }
  0x27   : > { %496 = vmatpush.msra.mxu0 %v997_v52  ;;  %536 = vmatpush.msra.mxu2 %v998_v54  ;;  %v398_v16 = vld [vmem:[%s1892_s3 + $0x1c8] sm:$0xff]  ;;  %v395_v18 = vld [vmem:[%s1892_s3 + $0x1b0] sm:$0xff]  ;;  %v396_v20 = vld [vmem:[%s1892_s3 + $0x1b8] sm:$0xff] }
  0x28   : > { %516 = vmatpush.msra.mxu1 %v1029_v53  ;;  %556 = vmatpush.msra.mxu3 %v1030_v55  ;;  %v284_v21 = vld [vmem:[%s1466_s30] sm:$0xff]  ;;  %v286_v23 = vld [vmem:[%s1466_s30 + $0x10] sm:$0x3]  ;;  %v362_v28 = vld [vmem:[%s1892_s3 + $0xa8] sm:$0xff] }
  0x29   : > { %497 = vmatpush.msra.mxu0 %v995_v56  ;;  %537 = vmatpush.msra.mxu2 %v996_v58  ;;  %v288_v24 = vld [vmem:[%s1890_s1] sm:$0x3]  ;;  %v394_v32 = vld [vmem:[%s1892_s3 + $0x1a8] sm:$0xff]  ;;  %v287_v34 = vld [vmem:[%s1466_s30 + $0x18] sm:$0x3] }
  0x2a   : > { %517 = vmatpush.msra.mxu1 %v1027_v57  ;;  %557 = vmatpush.msra.mxu3 %v1028_v59  ;;  %v298_v25 = vld [vmem:[%s1891_s2] sm:$0x3]  ;;  %v290_v29 = vperm.slane %v288_v24, 0  ;;  %v291_v31 = vperm.slane %v288_v24, 1  ;;  %v285_v33 = vld [vmem:[%s1466_s30 + $0x8] sm:$0xff]  ;;  %v359_v36 = vld [vmem:[%s1892_s3 + $0x90] sm:$0xff]  ;;  %s283_s30 = scalar_lea.vmem %s1894_s5, %s1129_s16 }
  0x2b   : > { %498 = vmatpush.msra.mxu0 %v993_v60  ;;  %538 = vmatpush.msra.mxu2 %v994_v62  ;;  %v361_v26 = vld [vmem:[%s1892_s3 + $0xa0] sm:$0xff]  ;;  %v300_v30 = vperm.slane %v298_v25, 0  ;;  %v301_v35 = vperm.slane %v298_v25, 1  ;;  %v391_v37 = vld [vmem:[%s1892_s3 + $0x190] sm:$0xff]  ;;  %v360_v42 = vld [vmem:[%s1892_s3 + $0x98] sm:$0xff] }
  0x2c   : > { %518 = vmatpush.msra.mxu1 %v1025_v61  ;;  %558 = vmatpush.msra.mxu3 %v1026_v63  ;;  %v393_v27 = vld [vmem:[%s1892_s3 + $0x1a0] sm:$0xff]  ;;  %v294_v38 = vmul.f32 %v290_v29, %v284_v21  ;;  %v296_v39 = vmul.f32 %v290_v29, %v286_v23  ;;  %v295_v41 = vmul.f32 %v291_v31, %v285_v33  ;;  %v392_v43 = vld [vmem:[%s1892_s3 + $0x198] sm:$0xff]  ;;  %v358_v50 = vld [vmem:[%s1892_s3 + $0x88] sm:$0xff] }
  0x2d   : > { %563 = vmatpush.msrb.mxu0 %v371_v0  ;;  %603 = vmatpush.msrb.mxu2 %v372_v2  ;;  %v297_v44 = vmul.f32 %v291_v31, %v287_v34  ;;  %v357_v45 = vld [vmem:[%s1892_s3 + $0x80] sm:$0xff]  ;;  %v390_v51 = vld [vmem:[%s1892_s3 + $0x188] sm:$0xff]  ;;  %v355_v53 = vld [vmem:[%s1892_s3 + $0x70] sm:$0xff] }
  0x2e   : > { %583 = vmatpush.msrb.mxu1 %v403_v1  ;;  %623 = vmatpush.msrb.mxu3 %v404_v3  ;;  %v389_v46 = vld [vmem:[%s1892_s3 + $0x180] sm:$0xff]  ;;  %v304_v47 = vadd.f32 %v300_v30, %v294_v38  ;;  %v306_v48 = vadd.f32 %v300_v30, %v296_v39  ;;  %v305_v49 = vadd.f32 %v301_v35, %v295_v41  ;;  %v387_v54 = vld [vmem:[%s1892_s3 + $0x170] sm:$0xff]  ;;  %v356_v57 = vld [vmem:[%s1892_s3 + $0x78] sm:$0xff] }
  0x2f   : > { %564 = vmatpush.msrb.mxu0 %v369_v4  ;;  %604 = vmatpush.msrb.mxu2 %v370_v6  ;;  %v307_v52 = vadd.f32 %v301_v35, %v297_v44  ;;  %v388_v58 = vld [vmem:[%s1892_s3 + $0x178] sm:$0xff]  ;;  %v353_v59 = vld [vmem:[%s1892_s3 + $0x60] sm:$0xff]  ;;  %v354_v63 = vld [vmem:[%s1892_s3 + $0x68] sm:$0xff] }
  0x30   : > { %584 = vmatpush.msrb.mxu1 %v401_v5  ;;  %624 = vmatpush.msrb.mxu3 %v402_v7  ;;  %v1547_v55 = vmax.f32 %v304_v47, 0.0  ;;  %v310_v56 = vmax.f32 %v306_v48, 0.0  ;;  %v385_v60 = vld [vmem:[%s1892_s3 + $0x160] sm:$0xff]  ;;  %v1562_v61 = vmax.f32 %v305_v49, 0.0  ;;  %v386_v0 = vld [vmem:[%s1892_s3 + $0x168] sm:$0xff]  ;;  %v351_v3 = vld [vmem:[%s1892_s3 + $0x50] sm:$0xff] }
  0x31   : > { %565 = vmatpush.msrb.mxu0 %v367_v8  ;;  %605 = vmatpush.msrb.mxu2 %v368_v11  ;;  %v311_v62 = vmax.f32 %v307_v52, 0.0  ;;  %v383_v4 = vld [vmem:[%s1892_s3 + $0x150] sm:$0xff]  ;;  %v352_v5 = vld [vmem:[%s1892_s3 + $0x58] sm:$0xff]  ;;  %v349_v7 = vld [vmem:[%s1892_s3 + $0x40] sm:$0xff] }
  0x32   : > { %585 = vmatpush.msrb.mxu1 %v399_v9  ;;  %625 = vmatpush.msrb.mxu3 %v400_v12  ;;  %v1573_v1 = vsel %vm315_vm0, %v1547_v55, 0.0  ;;  %v1576_v2 = vsel %vm324_vm1, %v310_v56, 0.0  ;;  %v384_v6 = vld [vmem:[%s1892_s3 + $0x158] sm:$0xff]  ;;  %v381_v8 = vld [vmem:[%s1892_s3 + $0x140] sm:$0xff]  ;;  %v1601_v11 = vsel %vm315_vm0, %v1562_v61, 0.0  ;;  %v346_v25 = vld [vmem:[%s1892_s3 + $0x28] sm:$0xff] }
  0x33   : > { %566 = vmatpush.msrb.mxu0 %v365_v13  ;;  %606 = vmatpush.msrb.mxu2 %v366_v15  ;;  %v475_v9 = vrot.slane %v1573_v1, 1  ;;  %v476_v10 = vrot.slane %v1576_v2, 1  ;;  %v1604_v12 = vsel %vm324_vm1, %v311_v62, 0.0  ;;  %v350_v13 = vld [vmem:[%s1892_s3 + $0x48] sm:$0xff]  ;;  %v347_v15 = vld [vmem:[%s1892_s3 + $0x30] sm:$0xff]  ;;  %v345_v23 = vld [vmem:[%s1892_s3 + $0x20] sm:$0xff] }
  0x34   : > { %586 = vmatpush.msrb.mxu1 %v397_v14  ;;  %626 = vmatpush.msrb.mxu3 %v398_v16  ;;  %v382_v14 = vld [vmem:[%s1892_s3 + $0x148] sm:$0xff]  ;;  %v379_v16 = vld [vmem:[%s1892_s3 + $0x130] sm:$0xff]  ;;  %v377_v24 = vld [vmem:[%s1892_s3 + $0x120] sm:$0xff] }
  0x35   : > { %567 = vmatpush.msrb.mxu0 %v363_v17  ;;  %607 = vmatpush.msrb.mxu2 %v364_v19  ;;  %v348_v17 = vld [vmem:[%s1892_s3 + $0x38] sm:$0xff]  ;;  %v478_v19 = vrot.slane %v1601_v11, 1  ;;  %v477_v21 = vsel %vm474_vm2, %v475_v9, %v476_v10  ;;  %v375_v29 = vld [vmem:[%s1892_s3 + $0x110] sm:$0xff]  ;;  %v373_v33 = vld [vmem:[%s1892_s3 + $0x100] sm:$0xff] }
  0x36   : > { %587 = vmatpush.msrb.mxu1 %v395_v18  ;;  %627 = vmatpush.msrb.mxu3 %v396_v20  ;;  %v380_v18 = vld [vmem:[%s1892_s3 + $0x138] sm:$0xff]  ;;  %v479_v20 = vrot.slane %v1604_v12, 1  ;;  %v342_v34 = vld [vmem:[%s1892_s3 + $0x8] sm:$0xff]  ;;  %v1089_v40 = vld [vmem:[%s1892_s3 + $0x4e0] sm:$0xff] }
  0x37   : > { %568 = vmatpush.msrb.mxu0 %v361_v26  ;;  %608 = vmatpush.msrb.mxu2 %v362_v28  ;;  %v378_v26 = vld [vmem:[%s1892_s3 + $0x128] sm:$0xff]  ;;  %v344_v30 = vld [vmem:[%s1892_s3 + $0x18] sm:$0xff]  ;;  %v1121_v41 = vld [vmem:[%s1892_s3 + $0x5e0] sm:$0xff] }
  0x38   : > { %588 = vmatpush.msrb.mxu1 %v393_v27  ;;  %628 = vmatpush.msrb.mxu3 %v394_v32  ;;  %v343_v27 = vld [vmem:[%s1892_s3 + $0x10] sm:$0xff]  ;;  %v480_v28 = vsel %vm474_vm2, %v478_v19, %v479_v20  ;;  %v376_v31 = vld [vmem:[%s1892_s3 + $0x118] sm:$0xff]  ;;  %v341_v32 = vld [vmem:[%s1892_s3] sm:$0xff] }
  0x39   : > { %569 = vmatpush.msrb.mxu0 %v359_v36  ;;  %609 = vmatpush.msrb.mxu2 %v360_v42  ;;  %v374_v35 = vld [vmem:[%s1892_s3 + $0x108] sm:$0xff]  ;;  %v1091_v36 = vld [vmem:[%s1892_s3 + $0x4f0] sm:$0xff]  ;;  %v1092_v38 = vld [vmem:[%s1892_s3 + $0x4f8] sm:$0xff] }
  0x3a   : > { %589 = vmatpush.msrb.mxu1 %v391_v37  ;;  %629 = vmatpush.msrb.mxu3 %v392_v43  ;;  %v1123_v37 = vld [vmem:[%s1892_s3 + $0x5f0] sm:$0xff]  ;;  %v1124_v39 = vld [vmem:[%s1892_s3 + $0x5f8] sm:$0xff]  ;;  %v1090_v42 = vld [vmem:[%s1892_s3 + $0x4e8] sm:$0xff] }
  0x3b   : > { %570 = vmatpush.msrb.mxu0 %v357_v45  ;;  %610 = vmatpush.msrb.mxu2 %v358_v50  ;;  %v1122_v43 = vld [vmem:[%s1892_s3 + $0x5e8] sm:$0xff]  ;;  %v1087_v44 = vld [vmem:[%s1892_s3 + $0x4d0] sm:$0xff]  ;;  %v1120_v47 = vld [vmem:[%s1892_s3 + $0x5d8] sm:$0xff] }
  0x3c   : > { %590 = vmatpush.msrb.mxu1 %v389_v46  ;;  %630 = vmatpush.msrb.mxu3 %v390_v51  ;;  %v1119_v45 = vld [vmem:[%s1892_s3 + $0x5d0] sm:$0xff]  ;;  %v1088_v46 = vld [vmem:[%s1892_s3 + $0x4d8] sm:$0xff]  ;;  %v1085_v48 = vld [vmem:[%s1892_s3 + $0x4c0] sm:$0xff] }
  0x3d   : > { %571 = vmatpush.msrb.mxu0 %v355_v53  ;;  %611 = vmatpush.msrb.mxu2 %v356_v57  ;;  %v1117_v49 = vld [vmem:[%s1892_s3 + $0x5c0] sm:$0xff]  ;;  %v1086_v50 = vld [vmem:[%s1892_s3 + $0x4c8] sm:$0xff]  ;;  %v1083_v52 = vld [vmem:[%s1892_s3 + $0x4b0] sm:$0xff] }
  0x3e   : > { %591 = vmatpush.msrb.mxu1 %v387_v54  ;;  %631 = vmatpush.msrb.mxu3 %v388_v58  ;;  %v1118_v51 = vld [vmem:[%s1892_s3 + $0x5c8] sm:$0xff]  ;;  %v1115_v53 = vld [vmem:[%s1892_s3 + $0x5b0] sm:$0xff]  ;;  %v1084_v54 = vld [vmem:[%s1892_s3 + $0x4b8] sm:$0xff] }
  0x3f   : > { %572 = vmatpush.msrb.mxu0 %v353_v59  ;;  %612 = vmatpush.msrb.mxu2 %v354_v63  ;;  %v1116_v56 = vld [vmem:[%s1892_s3 + $0x5b8] sm:$0xff]  ;;  %v1113_v57 = vld [vmem:[%s1892_s3 + $0x5a0] sm:$0xff]  ;;  %v1082_v59 = vld [vmem:[%s1892_s3 + $0x4a8] sm:$0xff] }
  0x40   : > { %592 = vmatpush.msrb.mxu1 %v385_v60  ;;  %632 = vmatpush.msrb.mxu3 %v386_v0  ;;  %v1081_v58 = vld [vmem:[%s1892_s3 + $0x4a0] sm:$0xff]  ;;  %v1114_v60 = vld [vmem:[%s1892_s3 + $0x5a8] sm:$0xff]  ;;  %v1079_v62 = vld [vmem:[%s1892_s3 + $0x490] sm:$0xff] }
  0x41   : > { %573 = vmatpush.msrb.mxu0 %v351_v3  ;;  %613 = vmatpush.msrb.mxu2 %v352_v5  ;;  %v1111_v63 = vld [vmem:[%s1892_s3 + $0x590] sm:$0xff]  ;;  %v1080_v0 = vld [vmem:[%s1892_s3 + $0x498] sm:$0xff]  ;;  %v1078_v5 = vld [vmem:[%s1892_s3 + $0x488] sm:$0xff] }
  0x42   : > { %593 = vmatpush.msrb.mxu1 %v383_v4  ;;  %633 = vmatpush.msrb.mxu3 %v384_v6  ;;  %v1112_v3 = vld [vmem:[%s1892_s3 + $0x598] sm:$0xff]  ;;  %v1109_v4 = vld [vmem:[%s1892_s3 + $0x580] sm:$0xff]  ;;  %v1110_v6 = vld [vmem:[%s1892_s3 + $0x588] sm:$0xff] }
  0x43   : > { %574 = vmatpush.msrb.mxu0 %v349_v7  ;;  %614 = vmatpush.msrb.mxu2 %v350_v13  ;;  %v1075_v22 = vld [vmem:[%s1892_s3 + $0x470] sm:$0xff]  ;;  %v1076_v7 = vld [vmem:[%s1892_s3 + $0x478] sm:$0xff]  ;;  %v1073_v9 = vld [vmem:[%s1892_s3 + $0x460] sm:$0xff] }
  0x44   : > { %594 = vmatpush.msrb.mxu1 %v381_v8  ;;  %634 = vmatpush.msrb.mxu3 %v382_v14  ;;  %v1108_v8 = vld [vmem:[%s1892_s3 + $0x578] sm:$0xff]  ;;  %v1105_v10 = vld [vmem:[%s1892_s3 + $0x560] sm:$0xff]  ;;  %v1074_v13 = vld [vmem:[%s1892_s3 + $0x468] sm:$0xff] }
  0x45   : > { %575 = vmatpush.msrb.mxu0 %v347_v15  ;;  %615 = vmatpush.msrb.mxu2 %v348_v17  ;;  %v1106_v14 = vld [vmem:[%s1892_s3 + $0x568] sm:$0xff]  ;;  %v1071_v15 = vld [vmem:[%s1892_s3 + $0x450] sm:$0xff]  ;;  %v1072_v17 = vld [vmem:[%s1892_s3 + $0x458] sm:$0xff] }
  0x46   : > { %595 = vmatpush.msrb.mxu1 %v379_v16  ;;  %635 = vmatpush.msrb.mxu3 %v380_v18  ;;  %v1103_v16 = vld [vmem:[%s1892_s3 + $0x550] sm:$0xff]  ;;  %v1104_v18 = vld [vmem:[%s1892_s3 + $0x558] sm:$0xff]  ;;  %v1069_v19 = vld [vmem:[%s1892_s3 + $0x440] sm:$0xff] }
  0x47   : > { %539 = vmatmul.f32.vlgmr.msra.gmra.mxu2 %v477_v21  ;;  %576 = vmatpush.msrb.mxu0 %v345_v23  ;;  %v1101_v20 = vld [vmem:[%s1892_s3 + $0x540] sm:$0xff]  ;;  %v1102_v23 = vld [vmem:[%s1892_s3 + $0x548] sm:$0xff] }
  0x48   : > { %596 = vmatpush.msrb.mxu1 %v377_v24  ;;  %616 = vmatpush.msrb.mxu2 %v346_v25  ;;  %v1067_v24 = vld [vmem:[%s1892_s3 + $0x430] sm:$0xff] }
  0x49   : > { %636 = vmatpush.msrb.mxu3 %v378_v26  ;;  %577 = vmatpush.msrb.mxu0 %v343_v27  ;;  %v1099_v25 = vld [vmem:[%s1892_s3 + $0x530] sm:$0xff]  ;;  %v1068_v26 = vld [vmem:[%s1892_s3 + $0x438] sm:$0xff] }
  0x4a   : > { %559 = vmatmul.f32.vlgmr.msra.gmra.mxu3 %v480_v28  ;;  %597 = vmatpush.msrb.mxu1 %v375_v29  ;;  %v1100_v27 = vld [vmem:[%s1892_s3 + $0x538] sm:$0xff]  ;;  %v1097_v29 = vld [vmem:[%s1892_s3 + $0x520] sm:$0xff] }
  0x4b   : > { %617 = vmatpush.msrb.mxu2 %v344_v30  ;;  %637 = vmatpush.msrb.mxu3 %v376_v31  ;;  %v1066_v30 = vld [vmem:[%s1892_s3 + $0x428] sm:$0xff] }
  0x4c   : > { %578 = vmatpush.msrb.mxu0 %v341_v32  ;;  %598 = vmatpush.msrb.mxu1 %v373_v33  ;;  %v1098_v31 = vld [vmem:[%s1892_s3 + $0x528] sm:$0xff]  ;;  %v709_v32 = vrot.slane %v1573_v1, 2  ;;  %v710_v33 = vrot.slane %v1576_v2, 2  ;;  %v1064_v1 = vld [vmem:[%s1892_s3 + $0x418] sm:$0xff] }
  0x4d   : > { %618 = vmatpush.msrb.mxu2 %v342_v34  ;;  %638 = vmatpush.msrb.mxu3 %v374_v35  ;;  %v712_v34 = vrot.slane %v1601_v11, 2  ;;  %v713_v35 = vrot.slane %v1604_v12, 2  ;;  %v1096_v2 = vld [vmem:[%s1892_s3 + $0x518] sm:$0xff]  ;;  %v1061_v11 = vld [vmem:[%s1892_s3 + $0x400] sm:$0xff] }
  0x4e   : > { %499 = vmatmul.f32.vlgmr.msra.gmra.mxu0 %v477_v21  ;;  %519 = vmatmul.f32.vlgmr.msra.gmra.mxu1 %v480_v28  ;;  %v1070_v21 = vld [vmem:[%s1892_s3 + $0x448] sm:$0xff]  ;;  %v1065_v28 = vld [vmem:[%s1892_s3 + $0x420] sm:$0xff] }
  0x4f   : > { %717 = vmatpush.msra.mxu0 %v1091_v36  ;;  %737 = vmatpush.msra.mxu1 %v1123_v37  ;;  %v1063_v36 = vld [vmem:[%s1892_s3 + $0x410] sm:$0xff]  ;;  %v1093_v12 = vld [vmem:[%s1892_s3 + $0x500] sm:$0xff] }
  0x50   : > { %757 = vmatpush.msra.mxu2 %v1092_v38  ;;  %777 = vmatpush.msra.mxu3 %v1124_v39  ;;  %v1095_v37 = vld [vmem:[%s1892_s3 + $0x510] sm:$0xff]  ;;  %v1062_v38 = vld [vmem:[%s1892_s3 + $0x408] sm:$0xff] }
  0x51   : > { %1059 = vmatmul.msk.f32.vlgmr.msrb.gmra.mxu2 %vm315_vm0, %v1547_v55  ;;  %718 = vmatpush.msra.mxu0 %v1089_v40  ;;  %v1094_v39 = vld [vmem:[%s1892_s3 + $0x508] sm:$0xff]  ;;  %v711_v40 = vsel %vm708_vm3, %v709_v32, %v710_v33 }
  0x52   : > { %738 = vmatpush.msra.mxu1 %v1121_v41  ;;  %758 = vmatpush.msra.mxu2 %v1090_v42  ;;  %v714_v41 = vsel %vm708_vm3, %v712_v34, %v713_v35 }
  0x53   : > { %778 = vmatpush.msra.mxu3 %v1122_v43  ;;  %719 = vmatpush.msra.mxu0 %v1087_v44 }
  0x54   : > { %1060 = vmatmul.msk.f32.vlgmr.msrb.gmra.mxu3 %vm315_vm0, %v1562_v61  ;;  %739 = vmatpush.msra.mxu1 %v1119_v45 }
  0x55   : > { %759 = vmatpush.msra.mxu2 %v1088_v46  ;;  %779 = vmatpush.msra.mxu3 %v1120_v47 }
  0x56   : > { %720 = vmatpush.msra.mxu0 %v1085_v48  ;;  %740 = vmatpush.msra.mxu1 %v1117_v49 }
  0x57   : > { %760 = vmatpush.msra.mxu2 %v1086_v50  ;;  %780 = vmatpush.msra.mxu3 %v1118_v51 }
  0x58   : > { %721 = vmatpush.msra.mxu0 %v1083_v52  ;;  %741 = vmatpush.msra.mxu1 %v1115_v53 }
  0x59   : > { %761 = vmatpush.msra.mxu2 %v1084_v54  ;;  %781 = vmatpush.msra.mxu3 %v1116_v56 }
  0x5a   : > { %1057 = vmatmul.msk.f32.vlgmr.msrb.gmra.mxu0 %vm315_vm0, %v1547_v55  ;;  %742 = vmatpush.msra.mxu1 %v1113_v57  ;;  %v1077_v55 = vld [vmem:[%s1892_s3 + $0x480] sm:$0xff] }
  0x5b   : > { %722 = vmatpush.msra.mxu0 %v1081_v58  ;;  %762 = vmatpush.msra.mxu2 %v1082_v59 }
  0x5c   : > { %782 = vmatpush.msra.mxu3 %v1114_v60  ;;  %1058 = vmatmul.msk.f32.vlgmr.msrb.gmra.mxu1 %vm315_vm0, %v1562_v61  ;;  %v1107_v61 = vld [vmem:[%s1892_s3 + $0x570] sm:$0xff] }
  0x5d   : > { %723 = vmatpush.msra.mxu0 %v1079_v62  ;;  %743 = vmatpush.msra.mxu1 %v1111_v63 }
  0x5e   : > { %763 = vmatpush.msra.mxu2 %v1080_v0  ;;  %783 = vmatpush.msra.mxu3 %v1112_v3 }
  0x5f   : > { %724 = vmatpush.msra.mxu0 %v1077_v55  ;;  %744 = vmatpush.msra.mxu1 %v1109_v4 }
  0x60   : > { %764 = vmatpush.msra.mxu2 %v1078_v5  ;;  %784 = vmatpush.msra.mxu3 %v1110_v6 }
  0x61   : > { %725 = vmatpush.msra.mxu0 %v1075_v22  ;;  %745 = vmatpush.msra.mxu1 %v1107_v61 }
  0x62   : > { %765 = vmatpush.msra.mxu2 %v1076_v7  ;;  %785 = vmatpush.msra.mxu3 %v1108_v8 }
  0x63   : > { %726 = vmatpush.msra.mxu0 %v1073_v9  ;;  %746 = vmatpush.msra.mxu1 %v1105_v10 }
  0x64   : > { %766 = vmatpush.msra.mxu2 %v1074_v13  ;;  %786 = vmatpush.msra.mxu3 %v1106_v14 }
  0x65   : > { %727 = vmatpush.msra.mxu0 %v1071_v15  ;;  %747 = vmatpush.msra.mxu1 %v1103_v16 }
  0x66   : > { %767 = vmatpush.msra.mxu2 %v1072_v17  ;;  %787 = vmatpush.msra.mxu3 %v1104_v18 }
  0x67   : > { %728 = vmatpush.msra.mxu0 %v1069_v19  ;;  %748 = vmatpush.msra.mxu1 %v1101_v20 }
  0x68   : > { %768 = vmatpush.msra.mxu2 %v1070_v21  ;;  %788 = vmatpush.msra.mxu3 %v1102_v23 }
  0x69   : > { %729 = vmatpush.msra.mxu0 %v1067_v24  ;;  %749 = vmatpush.msra.mxu1 %v1099_v25 }
  0x6a   : > { %769 = vmatpush.msra.mxu2 %v1068_v26  ;;  %789 = vmatpush.msra.mxu3 %v1100_v27 }
  0x6b   : > { %730 = vmatpush.msra.mxu0 %v1065_v28  ;;  %750 = vmatpush.msra.mxu1 %v1097_v29 }
  0x6c   : > { %770 = vmatpush.msra.mxu2 %v1066_v30  ;;  %790 = vmatpush.msra.mxu3 %v1098_v31 }
  0x6d   : > { %731 = vmatpush.msra.mxu0 %v1063_v36  ;;  %751 = vmatpush.msra.mxu1 %v1095_v37 }
  0x6e   : > { %771 = vmatpush.msra.mxu2 %v1064_v1  ;;  %791 = vmatpush.msra.mxu3 %v1096_v2 }
  0x6f   : > { %732 = vmatpush.msra.mxu0 %v1061_v11  ;;  %752 = vmatpush.msra.mxu1 %v1093_v12 }
  0x70   : > { %772 = vmatpush.msra.mxu2 %v1062_v38  ;;  %792 = vmatpush.msra.mxu3 %v1094_v39 }
  0x71   : > { %733 = vmatmul.f32.vlgmr.msra.gmra.mxu0 %v711_v40  ;;  %753 = vmatmul.f32.vlgmr.msra.gmra.mxu1 %v714_v41 }
  0x72   : > { %773 = vmatmul.f32.vlgmr.msra.gmra.mxu2 %v711_v40  ;;  %793 = vmatmul.f32.vlgmr.msra.gmra.mxu3 %v714_v41 }
  0xca   : > { %v540_v44 = vpop.f32.mrf.mxu2 }
  0xcb   : > { %v500_v42 = vpop.f32.mrf.mxu0  ;;  %v520_v43 = vpop.f32.mrf.mxu1 }
  0xcc   : > { %v521_v48 = vadd.f32 %v520_v43, %v500_v42 }
  0xcd   : > { %v560_v45 = vpop.f32.mrf.mxu3 }
  0xce   : > { %v561_v52 = vadd.f32 %v560_v45, %v540_v44 }
  0xd4   : > { %v620_v50 = vpop.f32.mrf.mxu2 }
  0xd5   : > { %v621_v59 = vadd.f32 %v620_v50, %v561_v52 }
  0xd7   : > { %v580_v46 = vpop.f32.mrf.mxu0  ;;  %v640_v51 = vpop.f32.mrf.mxu3 }
  0xd8   : > { %v581_v49 = vadd.f32 %v580_v46, %v521_v48  ;;  %v641_v55 = vadd.f32 %v640_v51, %v621_v59 }
  0xd9   : > { %v600_v47 = vpop.f32.mrf.mxu1 }
  0xda   : > { %v601_v56 = vadd.f32 %v600_v47, %v581_v49 }
  0xee   : > { %v734_v53 = vpop.f32.mrf.mxu0  ;;  %v754_v54 = vpop.f32.mrf.mxu1 }
  0xef   : > { %v755_v57 = vadd.f32 %v754_v54, %v734_v53 }
  0xf1   : > { %v797_v58 = vadd.f32 %v755_v57, %v601_v56 }
  0xf3   : > { %799 = vst [vmem:[%s274_s15] sm:$0xff] %v797_v58  ;;  %v813_v60 = vmul.f32 %v797_v58, %v797_v58  ;;  %v801_v62 = vrot.slane %v797_v58, 4 }
  0xf5   : > { %v815_v63 = vrot.slane %v813_v60, 4  ;;  %v774_v0 = vpop.f32.mrf.mxu2  ;;  %v794_v3 = vpop.f32.mrf.mxu3  ;;  %v802_v6 = vadd.f32 %v801_v62, %v797_v58 }
  0xf6   : > { %v795_v4 = vadd.f32 %v794_v3, %v774_v0 }
  0xf7   : > { %v816_v5 = vadd.f32 %v815_v63, %v813_v60  ;;  %v803_v9 = vrot.slane %v802_v6, 2 }
  0xf8   : > { %v798_v22 = vadd.f32 %v795_v4, %v641_v55 }
  0xf9   : > { %v817_v61 = vrot.slane %v816_v5, 2  ;;  %v804_v17 = vadd.f32 %v803_v9, %v802_v6 }
  0xfa   : > { %800 = vst [vmem:[%s274_s15 + $0x8] sm:$0xff] %v798_v22  ;;  %v807_v7 = vrot.slane %v798_v22, 4  ;;  %v814_v8 = vmul.f32 %v798_v22, %v798_v22 }
  0xfb   : > { %v818_v14 = vadd.f32 %v817_v61, %v816_v5  ;;  %v805_v24 = vrot.slane %v804_v17, 1 }
  0xfc   : > { %v808_v10 = vadd.f32 %v807_v7, %v798_v22  ;;  %v821_v13 = vrot.slane %v814_v8, 4 }
  0xfd   : > { %v819_v20 = vrot.slane %v818_v14, 1  ;;  %v806_v29 = vadd.f32 %v805_v24, %v804_v17 }
  0xfe   : > { %v809_v15 = vrot.slane %v808_v10, 2  ;;  %v822_v16 = vadd.f32 %v821_v13, %v814_v8 }
  0xff   : > { %v820_v26 = vadd.f32 %v819_v20, %v818_v14 }
 0x100   : > { %v810_v18 = vadd.f32 %v809_v15, %v808_v10  ;;  %v823_v19 = vrot.slane %v822_v16, 2 }
 0x101   : > { %v828_v32 = vsel %vm827_vm4, %v806_v29, %v820_v26 }
 0x102   : > { %v811_v21 = vrot.slane %v810_v18, 1  ;;  %v824_v23 = vadd.f32 %v823_v19, %v822_v16 }
 0x104   : > { %v825_v25 = vrot.slane %v824_v23, 1  ;;  %v812_v27 = vadd.f32 %v811_v21, %v810_v18 }
 0x106   : > { %v826_v28 = vadd.f32 %v825_v25, %v824_v23 }
 0x108   : > { %v829_v30 = vsel %vm827_vm4, %v812_v27, %v826_v28 }
 0x109   : > { %v832_v31 = vrot.slane %v829_v30, 6 }
 0x10b   : > { %v834_v33 = vsel %vm833_vm5, %v828_v32, %v832_v31 }
 0x10c   : > { %836 = vst [vmem:[%s283_s30] sm:$0xf] %v834_v33 }
 0x10d PF: > { %s16_s20 = sadd.s32 1, %s1176_s20   ;;  %s1895_s18 = smov %s1172_s19 }
 0x10e   : > { %p13_p5 = scmp.ge.s32.totalorder %s16_s20, 4   ;;  %s1896_s19 = smov %s1898_s21 }
 0x110   :  { %15 = sbr.rel (!%p13_p5) target bundleno = 2 (0x2), region = 80 }

</bundles_post_ra>
